<compile_context>
chip_gen: v6e
topology: v6e:2x2x1
jax: 0.10.0
libtpu: 0.0.40
codegen_flags: <defaults>
</compile_context>

<pallas_src>
import jax
import jax.numpy as jnp
from jax.experimental import pallas as pl
from jax.experimental.pallas import tpu as pltpu


def linear_sigmoid_kernel(x_ref, w_ref, b_ref, o_ref):
    # x_ref: [TB, F]  VMEM (streamed over the batch grid axis)
    # w_ref: [1,  F]  VMEM (same block every step -> stays resident)
    # b_ref: [1]      SMEM scalar
    # o_ref: [1, TB]  VMEM (lane-dense output row)
    x = x_ref[...]
    w = w_ref[...]

    # GEMV for out_features == 1: contract the feature (last) axis of both
    # operands -- transpose-free, and the result is already laid out as a
    # lane-major [1, TB] row matching o_ref's lane-dense block.
    logits = jax.lax.dot_general(
        w, x,
        dimension_numbers=(((1,), (1,)), ((), ())),
        preferred_element_type=jnp.float32,
    )                                     # [1, TB], f32 accumulate
    logits = logits + b_ref[0]            # bias scalar read from SMEM

    # Numerically stable sigmoid (equivalent to jax.nn.sigmoid):
    # z = exp(-|x|) is in (0, 1], so there is never an inf intermediate.
    z = jnp.exp(-jnp.abs(logits))
    y = jnp.where(logits >= 0, 1.0 / (1.0 + z), z / (1.0 + z))

    o_ref[...] = y.astype(o_ref.dtype)


def net_forward(x, weight, bias, *, max_block_batch=4096,
                x_vmem_budget_bytes=8 * 1024 * 1024):
    """Pallas equivalent of Net.forward: sigmoid(x @ W^T + b) -> [B, 1]."""
    B, F = x.shape
    assert weight.shape == (1, F), weight.shape
    out_dtype = x.dtype
    itemsize = jnp.dtype(x.dtype).itemsize

    # Batch tile: as large as possible while the *double-buffered* x tile stays
    # inside a conservative VMEM budget (safe for v7x's 64 MiB VMEM / 32 MiB
    # scoped default as well as v5e/v6e).  Must be a multiple of 128 when the
    # batch is tiled so the lane-dense output block stays (8,128)-legal.
    tb_cap = max(128, x_vmem_budget_bytes // (2 * F * itemsize))
    tb = min(max_block_batch, (tb_cap // 128) * 128)
    if B <= tb:
        tb = B                      # single block: block dims == array dims
        b_pad = B
    else:
        b_pad = pl.cdiv(B, tb) * tb

    x_p = x if b_pad == B else jnp.pad(x, ((0, b_pad - B), (0, 0)))
    bias_smem = jnp.asarray(bias, dtype=jnp.float32).reshape(1)

    out_row = pl.pallas_call(
        linear_sigmoid_kernel,
        out_shape=jax.ShapeDtypeStruct((1, b_pad), out_dtype),
        grid=(b_pad // tb,),
        in_specs=[
            pl.BlockSpec((tb, F), lambda i: (i, 0)),             # x: streamed tiles
            pl.BlockSpec((1, F), lambda i: (0, 0)),              # W: VMEM-resident
            pl.BlockSpec(memory_space=pltpu.MemorySpace.SMEM),   # b: SMEM scalar
        ],
        out_specs=pl.BlockSpec((1, tb), lambda i: (0, i)),       # lane-dense row
        compiler_params=pltpu.CompilerParams(
            dimension_semantics=("parallel",),    # batch rows are independent
            vmem_limit_bytes=32 * 1024 * 1024,
        ),
    )(x_p, weight, bias_smem)

    # [1, B_pad] -> [B, 1]: free layout plumbing outside the kernel.
    return out_row[0, :B].reshape(B, 1)


if __name__ == "__main__":
    key = jax.random.PRNGKey(0)
    kx, kw, kb, kx2 = jax.random.split(key, 4)

    in_features = 32

    # nn.Linear(in_features, 1)-style parameters (deterministic, synthetic).
    bound = 1.0 / (in_features ** 0.5)
    weight = jax.random.uniform(kw, (1, in_features), dtype=jnp.float32,
                                minval=-bound, maxval=bound)
    bias = jax.random.uniform(kb, (1,), dtype=jnp.float32,
                              minval=-bound, maxval=bound)

    # Case 1: small batch (single block; block dims == array dims).
    batch = 8
    x = jax.random.normal(kx, (batch, in_features), dtype=jnp.float32)
    out = jax.block_until_ready(net_forward(x, weight, bias))
    ref = jax.nn.sigmoid(x @ weight.T + bias)
    assert out.shape == (batch, 1)
    assert jnp.allclose(out, ref, atol=1e-5, rtol=1e-5)

    # Case 2: batch larger than the tile -> exercises the padded, tiled,
    # multi-step "parallel" grid path.
    batch2 = 300
    x2 = jax.random.normal(kx2, (batch2, in_features), dtype=jnp.float32)
    out2 = jax.block_until_ready(
        net_forward(x2, weight, bias, max_block_batch=128))
    ref2 = jax.nn.sigmoid(x2 @ weight.T + bias)
    assert out2.shape == (batch2, 1)
    assert jnp.allclose(out2, ref2, atol=1e-5, rtol=1e-5)

    print("KERNEL_OK")
</pallas_src>

<mosaic_0001>
module attributes {stable_mosaic.version = 11 : i64} {
  func.func @linear_sigmoid_kernel(%arg0: i32, %arg1: memref<8x32xf32, #tpu.memory_space<vmem>>, %arg2: memref<1x32xf32, #tpu.memory_space<vmem>>, %arg3: memref<1xf32, #tpu.memory_space<smem>>, %arg4: memref<1x8xf32, #tpu.memory_space<vmem>>) attributes {dimension_semantics = [#tpu.dimension_semantics<parallel>], iteration_bounds = array<i64: 1>, scalar_prefetch = 0 : i64, scratch_operands = 0 : i64, tpu.core_type = #tpu.core_type<tc>, window_params = [{transform_indices = @transform_0, window_bounds = array<i64: 8, 32>}, {pipeline_mode = #tpu.pipeline_mode<synchronous>, transform_indices = @transform_1, window_bounds = array<i64: 1, 32>}, {transform_indices = @transform_2, window_bounds = array<i64: 1>}, {transform_indices = @transform_3, window_bounds = array<i64: 1, 8>}]} {
    %c0 = arith.constant 0 : index
    %c0_0 = arith.constant 0 : index
    %0 = vector.load %arg1[%c0, %c0_0] : memref<8x32xf32, #tpu.memory_space<vmem>>, vector<8x32xf32>
    %c0_1 = arith.constant 0 : index
    %c0_2 = arith.constant 0 : index
    %1 = vector.load %arg2[%c0_1, %c0_2] : memref<1x32xf32, #tpu.memory_space<vmem>>, vector<1x32xf32>
    %cst = arith.constant dense<0.000000e+00> : vector<1x8xf32>
    %2 = tpu.matmul %1, %0, %cst {dimension_numbers = #tpu.dot_dimension_numbers<[1], [1], [0], [0], [0, 0, 1, 0], [], []>} : vector<1x32xf32>, vector<8x32xf32>, vector<1x8xf32> -> vector<1x8xf32>
    %c0_3 = arith.constant 0 : index
    %3 = memref.load %arg3[%c0_3] : memref<1xf32, #tpu.memory_space<smem>>
    %4 = vector.broadcast %3 : f32 to vector<1x8xf32>
    %5 = arith.addf %2, %4 : vector<1x8xf32>
    %6 = math.absf %5 : vector<1x8xf32>
    %cst_4 = arith.constant 0.000000e+00 : f32
    %7 = vector.broadcast %cst_4 : f32 to vector<1x8xf32>
    %8 = arith.subf %7, %6 : vector<1x8xf32>
    %9 = math.exp %8 : vector<1x8xf32>
    %cst_5 = arith.constant 0.000000e+00 : f32
    %10 = vector.broadcast %cst_5 : f32 to vector<1x8xf32>
    %11 = arith.cmpf oge, %5, %10 : vector<1x8xf32>
    %cst_6 = arith.constant 1.000000e+00 : f32
    %12 = vector.broadcast %cst_6 : f32 to vector<1x8xf32>
    %13 = arith.addf %12, %9 : vector<1x8xf32>
    %cst_7 = arith.constant 1.000000e+00 : f32
    %14 = vector.broadcast %cst_7 : f32 to vector<1x8xf32>
    %15 = arith.divf %14, %13 : vector<1x8xf32>
    %cst_8 = arith.constant 1.000000e+00 : f32
    %16 = vector.broadcast %cst_8 : f32 to vector<1x8xf32>
    %17 = arith.addf %16, %9 : vector<1x8xf32>
    %18 = arith.divf %9, %17 : vector<1x8xf32>
    %19 = arith.select %11, %15, %18 : vector<1x8xi1>, vector<1x8xf32>
    %c0_9 = arith.constant 0 : index
    %c0_10 = arith.constant 0 : index
    %20 = vector.load %arg4[%c0_9, %c0_10] : memref<1x8xf32, #tpu.memory_space<vmem>>, vector<1x8xf32>
    tpu.vector_store %arg4[%c0_9, %c0_10], %19 {strides = array<i32>} : memref<1x8xf32, #tpu.memory_space<vmem>>, vector<1x8xf32>,
    return
  }
  func.func @transform_0(%arg0: i32) -> (i32, i32) {
    %c0_i32 = arith.constant 0 : i32
    %c0_i32_0 = arith.constant 0 : i32
    return %arg0, %c0_i32 : i32, i32
  }
  func.func @transform_1(%arg0: i32) -> (i32, i32) {
    %c0_i32 = arith.constant 0 : i32
    %c0_i32_0 = arith.constant 0 : i32
    %c0_i32_1 = arith.constant 0 : i32
    return %c0_i32, %c0_i32_0 : i32, i32
  }
  func.func @transform_2(%arg0: i32) -> i32 {
    %c0_i32 = arith.constant 0 : i32
    %c0_i32_0 = arith.constant 0 : i32
    return %c0_i32 : i32
  }
  func.func @transform_3(%arg0: i32) -> (i32, i32) {
    %c0_i32 = arith.constant 0 : i32
    %c0_i32_0 = arith.constant 0 : i32
    return %c0_i32, %arg0 : i32, i32
  }
}

</mosaic_0001>

<bundles_post_ra>
// kernel: tpu_custom_call.1
= control target key start
LH: loop header
LB: loop body
LE: loop exit
PB: predicated region body
PF: predicated region fallthrough
CT: control target
= control target key end

     0   :  { %9 = vsyncpa [#allocation4], 0  ;;  %s233_s0 = inlined_call_operand.hbm [shape: f32[8,32], index: 0, kind: input, shape index: {}]   ;;  %s234_s1 = inlined_call_operand.vmem [shape: f32[1,32], index: 1, kind: input, shape index: {}]   ;;  %s235_s2 = inlined_call_operand.<no memory space> [shape: f32[1], index: 2, kind: input, shape index: {}]   ;;  %s236_s3 = inlined_call_operand.hbm [shape: f32[1,8], index: 3, kind: output, shape index: {}]  }
   0x1   :  { %10 = vsyncpa [#allocation5], 0  ;;  %s197_s12 = smov [#allocation3]  }
   0x2   :  { %s17_s13 = sshll.u32 %s197_s12, 4  ;;  %s18_s13 = int_to_ptr.vmem [resolvable:$true] %s17_s13 }
   0x3   :  { %s161_s14 = scalar_lea.vmem %s18_s13, 128  ;;  %p166_p1 = scmp.lt.s32.totalorder %s18_s13, %s18_s13 }
   0x4   :  { %p162_p0 = scmp.ne.s32.totalorder %s18_s13, %s161_s14  ;;  %p167_p2 = scmp.lt.s32.totalorder %s161_s14, %s161_s14 }
   0x6   :  { %p168_p3 = por %p167_p2, %p166_p1 }
   0x8   :  { %p169_p4 = pnand %p168_p3, %p162_p0 }
   0xa   :  { %172 = shalt.err (!%p169_p4)
}
   0xb   :  { %20 = dma.hbm_to_vmem [thread:$0]  %s233_s0, 128, %s18_s13, [#allocation4]  }
   0xc   :  { %193 = dma.done.wait [#allocation4], 128  }
   0xd   :  { %194 = vsyncadd [#allocation4], 4294967168  ;;  %v198_v0 = vmov 0.0   ;;  %vm199_vm0 = vmmov 0   ;;  %vm32_vm1 = vcmask 261120   ;;  %v28_v1 = vld [vmem:[#allocation3] sm:$0xff]  ;;  %v31_v3 = vstv %s235_s2 }
   0xe   :  { %140 = vmatprep.subr.mxu0 %v198_v0  ;;  %142 = vmatprep.mubr.msk.f32.mxu0 %vm199_vm0, %v198_v0  ;;  %v29_v2 = vld [vmem:[%s234_s1] sm:$0x1]  ;;  %s200_s0 = smov [#allocation6]   ;;  %vm119_vm2 = vcmask 57344  }
   0xf   :  { %141 = vmatpush3.xpose.msk.msra.mxu0 %vm32_vm1, %v28_v1  ;;  %s127_s21 = sshll.u32 %s200_s0, 4  ;;  %s128_s21 = int_to_ptr.vmem [resolvable:$true] %s127_s21 }
  0x10   :  { %s173_s1 = scalar_lea.vmem %s128_s21, 16  ;;  %s177_s2 = scalar_lea.vmem %s128_s21, 32 }
  0x11   :  { %p174_p5 = scmp.ne.s32.totalorder %s128_s21, %s173_s1  ;;  %p178_p6 = scmp.lt.s32.totalorder %s128_s21, %s128_s21 }
  0x12   :  { %143 = vmatmul.mubr.msk.f32.vlgmr.msra.gmra.mxu0 %vm32_vm1, %v29_v2  ;;  %p179_p7 = scmp.lt.s32.totalorder %s177_s2, %s173_s1 }
  0x14   :  { %p180_p8 = por %p179_p7, %p178_p6 }
  0x16   :  { %p181_p9 = pnand %p180_p8, %p174_p5 }
  0xd2   :  { %v105_v4 = vpop.f32.mrf.mxu0 }
  0xd3   :  { %v106_v5 = vadd.f32 %v105_v4, %v31_v3 }
  0xd4   :  { %v144_v6 = vpop.f32.mrf.mxu0 }
  0xd5   :  { %v109_v7 = vand.u32 2147483647, %v106_v5  ;;  %vm113_vm3 = vcmp.ge.f32.partialorder %v106_v5, 0.0 }
  0xd7   :  { %v110_v8 = vsub.f32 0.0, %v109_v7 }
  0xd9   :  { %v111_v9 = vmul.f32 1.442695, %v110_v8 }
  0xdb   :  { %149 = vpow2.f32 %v111_v9 }
  0xe8   :  { %v150_v10 = vpop.eup %149 }
  0xe9   :  { %v114_v11 = vadd.f32 1.0, %v150_v10 }
  0xeb   :  { %151 = vrcp.f32 %v114_v11 }
  0xf8   :  { %v152_v12 = vpop.eup %151 }
  0xf9   :  { %v117_v13 = vmul.f32 %v152_v12, %v150_v10 }
  0xfb   :  { %v118_v14 = vsel %vm113_vm3, %v152_v12, %v117_v13 }
  0xfc   :  { %120 = vst.msk [vmem:[#allocation6] sm:$0x1] %vm119_vm2, %v118_v14 }
  0xfd   :  { %184 = shalt.err (!%p181_p9)
}
  0xfe   :  { %130 = dma.vmem_to_hbm [thread:$0]  %s128_s21, 16, %s236_s3, [#allocation5]  }
  0xff   :  { %195 = dma.done.wait [#allocation5], 16  }
 0x100   :  { %196 = vsyncadd [#allocation5], 4294967280 }
 0x101   :  { %134 = vsyncpa [#allocation4], 1 }
 0x102   :  { %135 = vsyncpa [#allocation5], 1 }

</bundles_post_ra>
